<compile_context>
chip_gen: v6e
topology: v6e:2x2x1
jax: 0.10.0
libtpu: 0.0.40
codegen_flags: <defaults>
</compile_context>

<pallas_src>
import functools

import jax
import jax.numpy as jnp
from jax.experimental import pallas as pl
from jax.experimental.pallas import tpu as pltpu

_LANE = 128


def _round_up(a, b):
    return ((a + b - 1) // b) * b


def _loss_kernel(pred_ref, label_ref, o_ref, acc_ref, *,
                 n_valid, inv_n, eps, needs_mask):
    i = pl.program_id(0)

    @pl.when(i == 0)
    def _():
        acc_ref[...] = jnp.zeros_like(acc_ref)

    tr, lane = pred_ref.shape
    d = pred_ref[...] - label_ref[...]          # VPU, lane-dense
    v = jnp.sqrt(d * d + eps)                   # EUP sqrt, lane-dense

    if needs_mask:
        # Zero out the tail padding so the sum (and mean) stay exact.
        row = jax.lax.broadcasted_iota(jnp.int32, (tr, lane), 0) + i * tr
        col = jax.lax.broadcasted_iota(jnp.int32, (tr, lane), 1)
        flat = row * lane + col
        v = jnp.where(flat < n_valid, v, 0.0)

    # Hot loop: sublane reduce only, accumulate into a (1, 128) lane vector.
    acc_ref[...] += jnp.sum(v, axis=0, keepdims=True)

    @pl.when(i == pl.num_programs(0) - 1)
    def _():
        # One cross-lane reduce + mean scale, scalar store to SMEM output.
        o_ref[0, 0] = jnp.sum(acc_ref[...]) * inv_n


def charbonnier_loss(pred, label, *, eps=1e-11, tile_rows=1024):
    """Pallas TPU equivalent of myLoss.forward(pred, label) -> scalar f32."""
    assert pred.shape == label.shape, "pred/label shape mismatch"
    pred = pred.astype(jnp.float32)
    label = label.astype(jnp.float32)

    n = int(pred.size)
    rows = -(-n // _LANE)                        # ceil(n / 128)
    tr = min(tile_rows, _round_up(rows, 8))      # block sublane dim % 8 == 0
    rows_p = _round_up(rows, tr)                 # whole number of grid tiles
    n_padded = rows_p * _LANE

    p = jnp.pad(pred.reshape(-1), (0, n_padded - n)).reshape(rows_p, _LANE)
    l = jnp.pad(label.reshape(-1), (0, n_padded - n)).reshape(rows_p, _LANE)

    kernel = functools.partial(
        _loss_kernel,
        n_valid=n,
        inv_n=1.0 / n,
        eps=float(eps),
        needs_mask=(n != n_padded),
    )

    out = pl.pallas_call(
        kernel,
        out_shape=jax.ShapeDtypeStruct((1, 1), jnp.float32),
        grid=(rows_p // tr,),
        in_specs=[
            pl.BlockSpec((tr, _LANE), lambda i: (i, 0)),
            pl.BlockSpec((tr, _LANE), lambda i: (i, 0)),
        ],
        out_specs=pl.BlockSpec((1, 1), lambda i: (0, 0),
                               memory_space=pltpu.MemorySpace.SMEM),
        scratch_shapes=[pltpu.VMEM((1, _LANE), jnp.float32)],
        compiler_params=pltpu.CompilerParams(
            dimension_semantics=("arbitrary",)),   # reduction over the grid
        cost_estimate=pl.CostEstimate(
            flops=4 * n, transcendentals=n, bytes_accessed=2 * n * 4 + 4),
    )(p, l)
    return out[0, 0]


def loss_reference(pred, label, eps=1e-11):
    """Pure-JAX mirror of the PyTorch forward."""
    return jnp.mean(jnp.sqrt((pred - label) ** 2 + eps))


if __name__ == "__main__":
    key = jax.random.PRNGKey(0)
    k1, k2, k3, k4 = jax.random.split(key, 4)

    # Case 1: shapes matching the demo (model predictions vs labels, (B, 1)).
    pred = jax.random.normal(k1, (64, 1), jnp.float32)
    label = jax.random.normal(k2, (64, 1), jnp.float32)
    out = jax.block_until_ready(charbonnier_loss(pred, label))
    ref = loss_reference(pred, label)
    assert out.shape == () and out.dtype == jnp.float32
    assert jnp.allclose(out, ref, atol=1e-6, rtol=1e-5), "case 1 mismatch"

    # Case 2: ragged 3-D shape + small tile to exercise multi-step grid,
    # the running accumulator, and the padding mask.
    pred2 = jax.random.normal(k3, (3, 777, 31), jnp.float32)
    label2 = jax.random.normal(k4, (3, 777, 31), jnp.float32)
    out2 = jax.block_until_ready(
        charbonnier_loss(pred2, label2, tile_rows=256))
    ref2 = loss_reference(pred2, label2)
    assert jnp.allclose(out2, ref2, atol=1e-6, rtol=1e-5), "case 2 mismatch"

    print("KERNEL_OK")
</pallas_src>

<mosaic_0001>
module attributes {stable_mosaic.version = 11 : i64} {
  func.func @_loss_kernel(%arg0: i32, %arg1: memref<8x128xf32, #tpu.memory_space<vmem>>, %arg2: memref<8x128xf32, #tpu.memory_space<vmem>>, %arg3: memref<1x1xf32, #tpu.memory_space<smem>>, %arg4: memref<1x128xf32, #tpu.memory_space<vmem>>) attributes {dimension_semantics = [#tpu.dimension_semantics<arbitrary>], iteration_bounds = array<i64: 1>, scalar_prefetch = 0 : i64, scratch_operands = 1 : i64, tpu.core_type = #tpu.core_type<tc>, window_params = [{transform_indices = @transform_0, window_bounds = array<i64: 8, 128>}, {transform_indices = @transform_1, window_bounds = array<i64: 8, 128>}, {transform_indices = @transform_2, window_bounds = array<i64: 1, 1>}]} {
    %c0_i32 = arith.constant 0 : i32
    %0 = arith.cmpi eq, %arg0, %c0_i32 : i32
    %1 = arith.extui %0 : i1 to i32
    %c0_i32_0 = arith.constant 0 : i32
    %2 = arith.cmpi ne, %1, %c0_i32_0 : i32
    scf.if %2 {
      %cst_12 = arith.constant 0.000000e+00 : f32
      %30 = vector.broadcast %cst_12 : f32 to vector<1x128xf32>
      %c0_13 = arith.constant 0 : index
      %c0_14 = arith.constant 0 : index
      %31 = vector.load %arg4[%c0_13, %c0_14] : memref<1x128xf32, #tpu.memory_space<vmem>>, vector<1x128xf32>
      tpu.vector_store %arg4[%c0_13, %c0_14], %30 {strides = array<i32>} : memref<1x128xf32, #tpu.memory_space<vmem>>, vector<1x128xf32>,
    } else {
    }
    %c0 = arith.constant 0 : index
    %c0_1 = arith.constant 0 : index
    %3 = vector.load %arg1[%c0, %c0_1] : memref<8x128xf32, #tpu.memory_space<vmem>>, vector<8x128xf32>
    %c0_2 = arith.constant 0 : index
    %c0_3 = arith.constant 0 : index
    %4 = vector.load %arg2[%c0_2, %c0_3] : memref<8x128xf32, #tpu.memory_space<vmem>>, vector<8x128xf32>
    %5 = arith.subf %3, %4 : vector<8x128xf32>
    %6 = arith.mulf %5, %5 : vector<8x128xf32>
    %cst = arith.constant 9.99999996E-12 : f32
    %7 = vector.broadcast %cst : f32 to vector<8x128xf32>
    %8 = arith.addf %6, %7 : vector<8x128xf32>
    %9 = math.sqrt %8 : vector<8x128xf32>
    %10 = tpu.iota {dimensions = array<i32: 0>} : vector<8x128xi32>
    %c8_i32 = arith.constant 8 : i32
    %11 = arith.muli %arg0, %c8_i32 : i32
    %12 = vector.broadcast %11 : i32 to vector<8x128xi32>
    %13 = arith.addi %10, %12 : vector<8x128xi32>
    %14 = tpu.iota {dimensions = array<i32: 1>} : vector<8x128xi32>
    %c128_i32 = arith.constant 128 : i32
    %15 = vector.broadcast %c128_i32 : i32 to vector<8x128xi32>
    %16 = arith.muli %13, %15 : vector<8x128xi32>
    %17 = arith.addi %16, %14 : vector<8x128xi32>
    %c64_i32 = arith.constant 64 : i32
    %18 = vector.broadcast %c64_i32 : i32 to vector<8x128xi32>
    %19 = arith.cmpi slt, %17, %18 : vector<8x128xi32>
    %cst_4 = arith.constant 0.000000e+00 : f32
    %20 = vector.broadcast %cst_4 : f32 to vector<8x128xf32>
    %21 = arith.select %19, %9, %20 : vector<8x128xi1>, vector<8x128xf32>
    %c0_5 = arith.constant 0 : index
    %c0_6 = arith.constant 0 : index
    %22 = vector.load %arg4[%c0_5, %c0_6] : memref<1x128xf32, #tpu.memory_space<vmem>>, vector<1x128xf32>
    %cst_7 = arith.constant dense<0.000000e+00> : vector<128xf32>
    %23 = vector.multi_reduction <add>, %21, %cst_7 [0] : vector<8x128xf32> to vector<128xf32>
    %24 = vector.shape_cast %23 : vector<128xf32> to vector<1x128xf32>
    %25 = arith.addf %22, %24 : vector<1x128xf32>
    %c0_8 = arith.constant 0 : index
    %c0_9 = arith.constant 0 : index
    %26 = vector.load %arg4[%c0_8, %c0_9] : memref<1x128xf32, #tpu.memory_space<vmem>>, vector<1x128xf32>
    tpu.vector_store %arg4[%c0_8, %c0_9], %25 {strides = array<i32>} : memref<1x128xf32, #tpu.memory_space<vmem>>, vector<1x128xf32>,
    %c0_i32_10 = arith.constant 0 : i32
    %27 = arith.cmpi eq, %arg0, %c0_i32_10 : i32
    %28 = arith.extui %27 : i1 to i32
    %c0_i32_11 = arith.constant 0 : i32
    %29 = arith.cmpi ne, %28, %c0_i32_11 : i32
    scf.if %29 {
      %c0_12 = arith.constant 0 : index
      %c0_13 = arith.constant 0 : index
      %30 = vector.load %arg4[%c0_12, %c0_13] : memref<1x128xf32, #tpu.memory_space<vmem>>, vector<1x128xf32>
      %31 = vector.shape_cast %30 : vector<1x128xf32> to vector<1x1x128xf32>
      %cst_14 = arith.constant dense<0.000000e+00> : vector<1xf32>
      %32 = vector.multi_reduction <add>, %31, %cst_14 [1, 2] : vector<1x1x128xf32> to vector<1xf32>
      %33 = vector.shape_cast %32 : vector<1xf32> to vector<1x1x1xf32>
      %34 = vector.extract %33[0, 0, 0] : f32 from vector<1x1x1xf32>
      %cst_15 = arith.constant 1.562500e-02 : f32
      %35 = arith.mulf %34, %cst_15 : f32
      %c0_16 = arith.constant 0 : index
      %c0_17 = arith.constant 0 : index
      %36 = memref.load %arg3[%c0_16, %c0_17] : memref<1x1xf32, #tpu.memory_space<smem>>
      memref.store %35, %arg3[%c0_16, %c0_17] : memref<1x1xf32, #tpu.memory_space<smem>>
    } else {
    }
    return
  }
  func.func @transform_0(%arg0: i32) -> (i32, i32) {
    %c0_i32 = arith.constant 0 : i32
    %c0_i32_0 = arith.constant 0 : i32
    return %arg0, %c0_i32 : i32, i32
  }
  func.func @transform_1(%arg0: i32) -> (i32, i32) {
    %c0_i32 = arith.constant 0 : i32
    %c0_i32_0 = arith.constant 0 : i32
    return %arg0, %c0_i32 : i32, i32
  }
  func.func @transform_2(%arg0: i32) -> (i32, i32) {
    %c0_i32 = arith.constant 0 : i32
    %c0_i32_0 = arith.constant 0 : i32
    %c0_i32_1 = arith.constant 0 : i32
    return %c0_i32, %c0_i32_0 : i32, i32
  }
}

</mosaic_0001>

<bundles_post_ra>
// kernel: tpu_custom_call.1
= control target key start
LH: loop header
LB: loop body
LE: loop exit
PB: predicated region body
PF: predicated region fallthrough
CT: control target
= control target key end

     0   :  { %7 = vsyncpa [#allocation4], 0  ;;  %s196_s0 = inlined_call_operand.hbm [shape: f32[8,128], index: 0, kind: input, shape index: {}]   ;;  %s197_s1 = inlined_call_operand.hbm [shape: f32[8,128], index: 1, kind: input, shape index: {}]   ;;  %s198_s2 = inlined_call_operand.hbm [shape: f32[1,1], index: 2, kind: output, shape index: {}]  }
   0x1   :  { %8 = vsyncpa [#allocation7], 0 }
   0x2   :  { %9 = vsyncpa [#allocation5], 0  ;;  %s168_s9 = smov [#allocation3]   ;;  %s169_s11 = smov [#allocation6]  }
   0x3   :  { %s16_s10 = sshll.u32 %s168_s9, 4  ;;  %s26_s12 = sshll.u32 %s169_s11, 4  ;;  %s17_s10 = int_to_ptr.vmem [resolvable:$true] %s16_s10  ;;  %s27_s12 = int_to_ptr.vmem [resolvable:$true] %s26_s12 }
   0x4   :  { %s122_s13 = scalar_lea.vmem %s17_s10, 128  ;;  %p127_p1 = scmp.lt.s32.totalorder %s17_s10, %s17_s10 }
   0x5   :  { %p123_p0 = scmp.ne.s32.totalorder %s17_s10, %s122_s13  ;;  %p128_p2 = scmp.lt.s32.totalorder %s122_s13, %s122_s13 }
   0x7   :  { %p129_p3 = por %p128_p2, %p127_p1 }
   0x9   :  { %p130_p4 = pnand %p129_p3, %p123_p0 }
   0xb   :  { %133 = shalt.err (!%p130_p4)
}
   0xc   :  { %19 = dma.hbm_to_vmem [thread:$0]  %s196_s0, 128, %s17_s10, [#allocation4]  }
   0xd   :  { %s142_s16 = scalar_lea.vmem %s27_s12, 128  ;;  %p147_p6 = scmp.lt.s32.totalorder %s27_s12, %s27_s12 }
   0xe   :  { %p143_p5 = scmp.ne.s32.totalorder %s27_s12, %s142_s16  ;;  %p148_p7 = scmp.lt.s32.totalorder %s142_s16, %s142_s16 }
  0x10   :  { %p149_p8 = por %p148_p7, %p147_p6 }
  0x12   :  { %p150_p9 = pnand %p149_p8, %p143_p5 }
  0x14   :  { %153 = shalt.err (!%p150_p9)
}
  0x15   :  { %29 = dma.hbm_to_vmem [thread:$0]  %s197_s1, 128, %s27_s12, [#allocation7]  }
  0x16   :  { %162 = dma.done.wait [#allocation4], 128  }
  0x17   :  { %163 = vsyncadd [#allocation4], 4294967168 }
  0x18   :  { %164 = dma.done.wait [#allocation7], 128  }
  0x19   :  { %165 = vsyncadd [#allocation7], 4294967168  ;;  %v170_v0 = vmov 0.0   ;;  %v41_v1 = vld [vmem:[#allocation3] sm:$0xff]  ;;  %v42_v2 = vld [vmem:[#allocation6] sm:$0xff]  ;;  %v53_v6 = vlaneseq  ;;  %vm77_vm3 = vcmask 1040384  }
  0x1a   :  { %40 = vst [vmem:[#allocation2] sm:$0x1] %v170_v0  ;;  %v43_v3 = vsub.f32 %v41_v1, %v42_v2  ;;  %s171_s19 = smov [#allocation8]  }
  0x1b   :  { %v54_v7 = vshrl.u32 %v53_v6, 7  ;;  %v59_v8 = vand.u32 127, %v53_v6 }
  0x1c   :  { %v44_v4 = vmul.f32 %v43_v3, %v43_v3 }
  0x1d   :  { %v60_v9 = vmul.u32 128, %v54_v7 }
  0x1e   :  { %v45_v5 = vadd.f32 1e-11, %v44_v4 }
  0x1f   :  { %v61_v10 = vadd.s32 %v60_v9, %v59_v8 }
  0x20   :  { %112 = vrsqrt.f32 %v45_v5  ;;  %vm48_vm0 = vcmp.eq.f32.partialorder %v45_v5, inf  ;;  %v51_v12 = vand.u32 2147483648, %v45_v5  ;;  %vm50_vm1 = vcmp.eq.f32.partialorder %v45_v5, 0.0 }
  0x21   :  { %vm62_vm2 = vcmp.lt.s32.totalorder %v61_v10, 64  ;;  %v64_v22 = vld [vmem:[#allocation2] sm:$0x1] }
  0x2d   :  { %v113_v11 = vpop.eup %112 }
  0x2e   :  { %v47_v13 = vmul.f32 %v113_v11, %v45_v5 }
  0x30   :  { %v49_v14 = vsel %vm48_vm0, %v45_v5, %v47_v13 }
  0x31   :  { %v52_v15 = vsel %vm50_vm1, %v51_v12, %v49_v14 }
  0x32   :  { %v63_v16 = vsel %vm62_vm2, %v52_v15, 0.0 }
  0x33   :  { %v65_v17 = vrot.slane %v63_v16, 4 }
  0x35   :  { %v66_v18 = vadd.f32 %v65_v17, %v63_v16 }
  0x37   :  { %v67_v19 = vrot.slane %v66_v18, 2 }
  0x39   :  { %v68_v20 = vadd.f32 %v67_v19, %v66_v18 }
  0x3b   :  { %v69_v21 = vrot.slane %v68_v20, 1 }
  0x3d   :  { %v70_v23 = vadd.f32 %v69_v21, %v68_v20 }
  0x3f   :  { %v71_v24 = vadd.f32 %v70_v23, %v64_v22 }
  0x41   :  { %72 = vst [vmem:[#allocation2] sm:$0x1] %v71_v24 }
  0x48   :  { %v76_v25 = vld [vmem:[#allocation2] sm:$0x1] }
  0x49   :  { %v78_v26 = vsel %vm77_vm3, %v76_v25, 0.0 }
  0x4a   :  { %79 = vadd.xlane.f32.xlu0 %v78_v26 }
  0xd3   :  { %v80_v27 = vpop.xlane.xlu0 %79 }
  0xd4   :  { %v81_v28 = vrot.slane %v80_v27, 4 }
  0xd6   :  { %v82_v29 = vadd.f32 %v81_v28, %v80_v27 }
  0xd8   :  { %v83_v30 = vrot.slane %v82_v29, 2 }
  0xda   :  { %v84_v31 = vadd.f32 %v83_v30, %v82_v29 }
  0xdc   :  { %v85_v32 = vrot.slane %v84_v31, 1 }
  0xde   :  { %v86_v33 = vadd.f32 %v85_v32, %v84_v31 }
  0xe0   :  { %106 = vpush %v86_v33 }
 0x111   :  { %s107_s0 = spop %106 }
 0x112   :  { %s88_s1 = smul.f32 0.015625, %s107_s0 }
 0x114   :  { %90 = sst [smem:[#allocation8]] %s88_s1 }
 0x115   :  { %98 = dma.smem_to_hbm %s171_s19, 16, %s198_s2, [#allocation5]  }
 0x116   :  { %166 = dma.done.wait [#allocation5], 16  }
 0x117   :  { %167 = vsyncadd [#allocation5], 4294967280 }
 0x118   :  { %102 = sfence }
 0x119   :  { %103 = vsyncpa [#allocation4], 1 }
 0x11a   :  { %104 = vsyncpa [#allocation7], 1 }
 0x11b   :  { %105 = vsyncpa [#allocation5], 1 }

</bundles_post_ra>
